<compile_context>
chip_gen: v7x
topology: tpu7x:2x2x1
jax: 0.10.0
libtpu: 0.0.40
codegen_flags: <defaults>
</compile_context>

<pallas_src>
import functools

import jax
import jax.numpy as jnp
from jax.experimental import pallas as pl
from jax.experimental.pallas import tpu as pltpu

_F_IN = 4              # ['Year', 'Present_Price', 'Kms_Driven', 'Owner']
_SPR = 128             # samples per lane-row (512 lanes / 4 interleaved features)
_LANES = _F_IN * _SPR  # 512
_SUB = 8               # sublane granularity
_MAX_BLOCK_ROWS = 512  # 512 x 512 f32 = 1 MiB input block


def _plan_tiles(batch):
    """Padded row count (multiple of 8) and rows-per-block for a given batch."""
    rows = pl.cdiv(max(batch, 1), _SPR)
    rows = pl.cdiv(rows, _SUB) * _SUB           # pad only to 8-row granularity
    if rows >= 2 * _SUB:
        limit = min(rows // 2, _MAX_BLOCK_ROWS)  # guarantee >= 2 grid steps (v7x)
    else:
        limit = rows
    block_rows = _SUB
    cand = (limit // _SUB) * _SUB
    while cand >= _SUB:
        if rows % cand == 0:                     # block must tile the padded rows
            block_rows = cand
            break
        cand -= _SUB
    return rows, block_rows


def _predict_block(wmat_ref, bias_ref, x_ref):
    """Lane-dense predictions for one block.

    x_ref   : (block_rows, 512) VMEM -- row-major samples, features interleaved on lanes
    wmat_ref: (512, 128)        VMEM -- kron(I_128, w^T): contraction + 4:1 compaction
    bias_ref: (1,)              SMEM
    returns : (block_rows, 128) f32  -- one prediction per lane (sample 128*r + j)
    """
    return jnp.dot(x_ref[...], wmat_ref[...],
                   preferred_element_type=jnp.float32) + bias_ref[0]


def _fwd_kernel(wmat_ref, bias_ref, x_ref, out_ref):
    out_ref[...] = _predict_block(wmat_ref, bias_ref, x_ref).astype(out_ref.dtype)


def _fwd_l1_kernel(wmat_ref, bias_ref, x_ref, tgt_ref, out_ref, l1_ref, *, batch):
    pred = _predict_block(wmat_ref, bias_ref, x_ref)
    out_ref[...] = pred.astype(out_ref.dtype)

    # Fused F.l1_loss epilogue: masked |pred - target| partial sum for this block.
    br, spr = out_ref.shape
    row0 = pl.program_id(0) * br
    sub = jax.lax.broadcasted_iota(jnp.int32, (br, spr), 0)
    lane = jax.lax.broadcasted_iota(jnp.int32, (br, spr), 1)
    sample = (row0 + sub) * spr + lane
    diff = jnp.where(sample < batch,
                     jnp.abs(pred - tgt_ref[...].astype(jnp.float32)),
                     0.0)
    total = jnp.sum(diff, axis=0, keepdims=True)              # (1, 128) sublane reduce
    out_sub = jax.lax.broadcasted_iota(jnp.int32, (_SUB, spr), 0)
    l1_ref[...] = jnp.where(out_sub == 0, total, 0.0)         # partials in sublane 0


def _linear_pallas(x, weight, bias, targets=None):
    batch, f_in = x.shape
    f_out = weight.shape[0]
    assert f_in == _F_IN and f_out == 1 and weight.shape == (f_out, f_in)

    rows, block_rows = _plan_tiles(batch)
    b_pad = rows * _SPR
    grid = (rows // block_rows,)

    # Free view of the row-major input (no transpose pass): lane group j of row r
    # holds the 4 features of sample 128*r + j.
    x_flat = x.reshape(-1)
    pad = b_pad * _F_IN - x_flat.shape[0]
    if pad:
        x_flat = jnp.pad(x_flat, (0, pad))
    x2d = x_flat.reshape(rows, _LANES)

    # Fold the (1, 4) weight row into a block-diagonal (512, 128) matrix so a single
    # MXU matmul does both the K=4 contraction and the 4:1 de-interleave.
    w32 = weight.astype(jnp.float32)
    wmat = jnp.kron(jnp.eye(_SPR, dtype=jnp.float32), w32.reshape(_F_IN, 1))
    b32 = bias.reshape(f_out).astype(jnp.float32)

    wmat_spec = pl.BlockSpec((_LANES, _SPR), lambda i: (0, 0))   # fetched once
    bias_spec = pl.BlockSpec(memory_space=pltpu.MemorySpace.SMEM)
    # If profiling on v6e shows exposed input DMA, add pipeline_mode=pl.Buffered(3).
    x_spec = pl.BlockSpec((block_rows, _LANES), lambda i: (i, 0))
    out_spec = pl.BlockSpec((block_rows, _SPR), lambda i: (i, 0))
    params = pltpu.CompilerParams(dimension_semantics=("parallel",))

    if targets is None:
        out2d = pl.pallas_call(
            _fwd_kernel,
            out_shape=jax.ShapeDtypeStruct((rows, _SPR), x.dtype),
            grid_spec=pltpu.PrefetchScalarGridSpec(
                num_scalar_prefetch=0,
                grid=grid,
                in_specs=[wmat_spec, bias_spec, x_spec],
                out_specs=out_spec,
            ),
            compiler_params=params,
        )(wmat, b32, x2d)
        return out2d.reshape(b_pad, 1)[:batch], None

    # Fused validation_step path: forward + masked L1 partial sums.
    t_flat = targets.reshape(-1).astype(x.dtype)
    tpad = b_pad - t_flat.shape[0]
    if tpad:
        t_flat = jnp.pad(t_flat, (0, tpad))
    t2d = t_flat.reshape(rows, _SPR)

    tgt_spec = pl.BlockSpec((block_rows, _SPR), lambda i: (i, 0))
    l1_spec = pl.BlockSpec((_SUB, _SPR), lambda i: (i, 0))

    out2d, l1_partials = pl.pallas_call(
        functools.partial(_fwd_l1_kernel, batch=batch),
        out_shape=(jax.ShapeDtypeStruct((rows, _SPR), x.dtype),
                   jax.ShapeDtypeStruct((grid[0] * _SUB, _SPR), jnp.float32)),
        grid_spec=pltpu.PrefetchScalarGridSpec(
            num_scalar_prefetch=0,
            grid=grid,
            in_specs=[wmat_spec, bias_spec, x_spec, tgt_spec],
            out_specs=(out_spec, l1_spec),
        ),
        compiler_params=params,
    )(wmat, b32, x2d, t2d)

    out = out2d.reshape(b_pad, 1)[:batch]
    val_loss = jnp.sum(l1_partials) / batch      # mean-reduction F.l1_loss
    return out, val_loss


@jax.jit
def cars_model_forward(x, weight, bias):
    """CarsModel.forward: out = x @ W^T + b."""
    out, _ = _linear_pallas(x, weight, bias, targets=None)
    return out


@jax.jit
def cars_model_validation_step(x, targets, weight, bias):
    """CarsModel.validation_step: forward + fused F.l1_loss epilogue."""
    return _linear_pallas(x, weight, bias, targets=targets)


if __name__ == "__main__":
    input_size = 4    # ['Year', 'Present_Price', 'Kms_Driven', 'Owner']
    output_size = 1   # ['Selling_Price']

    key = jax.random.PRNGKey(0)
    kw, kb, kd = jax.random.split(key, 3)

    # Deterministic init in nn.Linear's uniform(-1/sqrt(in), 1/sqrt(in)) range.
    bound = 1.0 / jnp.sqrt(jnp.float32(input_size))
    weight = jax.random.uniform(kw, (output_size, input_size), jnp.float32,
                                minval=-bound, maxval=bound)
    bias = jax.random.uniform(kb, (output_size,), jnp.float32,
                              minval=-bound, maxval=bound)

    def ref_forward(xa):
        # Element-wise f32 reference (no dot), matches nn.Linear semantics.
        return jnp.sum(xa * weight[0], axis=-1, keepdims=True) + bias[0]

    # batch=128 matches the module's DataLoader batch_size; 300 exercises the
    # non-aligned padded tail; 3000 exercises a multi-block "parallel" grid.
    for bsz in (128, 300, 3000):
        kx, kt, kd = jax.random.split(kd, 3)
        x = jax.random.normal(kx, (bsz, input_size), jnp.float32)
        tgt = jax.random.normal(kt, (bsz, output_size), jnp.float32)

        out = jax.block_until_ready(cars_model_forward(x, weight, bias))
        ref = ref_forward(x)
        assert out.shape == (bsz, output_size)
        assert jnp.allclose(out, ref, atol=1e-3, rtol=1e-3), f"forward mismatch @B={bsz}"

        out_v, val_loss = cars_model_validation_step(x, tgt, weight, bias)
        jax.block_until_ready((out_v, val_loss))
        ref_loss = jnp.mean(jnp.abs(ref - tgt))
        assert out_v.shape == (bsz, output_size)
        assert jnp.allclose(out_v, ref, atol=1e-3, rtol=1e-3), f"val fwd mismatch @B={bsz}"
        assert jnp.allclose(val_loss, ref_loss, atol=1e-3, rtol=1e-3), f"val_loss mismatch @B={bsz}"

    # TODO(synk): DataLoader/random_split batching and validation_epoch_end's
    # host-side .item()/printing are left as plain-JAX/host glue.
    print("KERNEL_OK")
</pallas_src>

<mosaic_0001>
module attributes {stable_mosaic.version = 11 : i64} {
  func.func @_fwd_kernel(%arg0: i32, %arg1: memref<512x128xf32, #tpu.memory_space<vmem>>, %arg2: memref<1xf32, #tpu.memory_space<smem>>, %arg3: memref<8x512xf32, #tpu.memory_space<vmem>>, %arg4: memref<8x128xf32, #tpu.memory_space<vmem>>) attributes {dimension_semantics = [#tpu.dimension_semantics<parallel>], iteration_bounds = array<i64: 1>, scalar_prefetch = 0 : i64, scratch_operands = 0 : i64, tpu.core_type = #tpu.core_type<tc>, window_params = [{pipeline_mode = #tpu.pipeline_mode<synchronous>, transform_indices = @transform_0, window_bounds = array<i64: 512, 128>}, {transform_indices = @transform_1, window_bounds = array<i64: 1>}, {transform_indices = @transform_2, window_bounds = array<i64: 8, 512>}, {transform_indices = @transform_3, window_bounds = array<i64: 8, 128>}]} {
    %c0 = arith.constant 0 : index
    %c0_0 = arith.constant 0 : index
    %0 = vector.load %arg3[%c0, %c0_0] : memref<8x512xf32, #tpu.memory_space<vmem>>, vector<8x512xf32>
    %c0_1 = arith.constant 0 : index
    %c0_2 = arith.constant 0 : index
    %1 = vector.load %arg1[%c0_1, %c0_2] : memref<512x128xf32, #tpu.memory_space<vmem>>, vector<512x128xf32>
    %cst = arith.constant dense<0.000000e+00> : vector<8x128xf32>
    %2 = tpu.matmul %0, %1, %cst {dimension_numbers = #tpu.dot_dimension_numbers<[1], [0], [0], [1], [0, 0, 1, 1], [], []>} : vector<8x512xf32>, vector<512x128xf32>, vector<8x128xf32> -> vector<8x128xf32>
    %c0_3 = arith.constant 0 : index
    %3 = memref.load %arg2[%c0_3] : memref<1xf32, #tpu.memory_space<smem>>
    %4 = vector.broadcast %3 : f32 to vector<8x128xf32>
    %5 = arith.addf %2, %4 : vector<8x128xf32>
    %c0_4 = arith.constant 0 : index
    %c0_5 = arith.constant 0 : index
    %6 = vector.load %arg4[%c0_4, %c0_5] : memref<8x128xf32, #tpu.memory_space<vmem>>, vector<8x128xf32>
    tpu.vector_store %arg4[%c0_4, %c0_5], %5 {strides = array<i32>} : memref<8x128xf32, #tpu.memory_space<vmem>>, vector<8x128xf32>,
    return
  }
  func.func @transform_0(%arg0: i32) -> (i32, i32) {
    %c0_i32 = arith.constant 0 : i32
    %c0_i32_0 = arith.constant 0 : i32
    %c0_i32_1 = arith.constant 0 : i32
    return %c0_i32, %c0_i32_0 : i32, i32
  }
  func.func @transform_1(%arg0: i32) -> i32 {
    %c0_i32 = arith.constant 0 : i32
    %c0_i32_0 = arith.constant 0 : i32
    return %c0_i32 : i32
  }
  func.func @transform_2(%arg0: i32) -> (i32, i32) {
    %c0_i32 = arith.constant 0 : i32
    %c0_i32_0 = arith.constant 0 : i32
    return %arg0, %c0_i32 : i32, i32
  }
  func.func @transform_3(%arg0: i32) -> (i32, i32) {
    %c0_i32 = arith.constant 0 : i32
    %c0_i32_0 = arith.constant 0 : i32
    return %arg0, %c0_i32 : i32, i32
  }
}

</mosaic_0001>

<bundles_post_ra>
// kernel: cars_model_forward.1
= control target key start
LH: loop header
LB: loop body
LE: loop exit
PB: predicated region body
PF: predicated region fallthrough
CT: control target
= control target key end

     0   :  { %s594_s0 = inlined_call_operand.vmem [shape: f32[512,128], index: 0, kind: input, shape index: {}]   ;;  %s595_s2 = inlined_call_operand.vmem [shape: f32[8,512], index: 2, kind: input, shape index: {}]   ;;  %s596_s1 = inlined_call_operand.<no memory space> [shape: f32[1], index: 1, kind: input, shape index: {}]   ;;  %s597_s3 = inlined_call_operand.vmem [shape: f32[8,128], index: 3, kind: output, shape index: {}]  }
   0x1   :  { %v35_v0 = vld [vmem:[%s594_s0 + $0x80] sm:$0xff]  ;;  %v36_v1 = vld [vmem:[%s594_s0 + $0x88] sm:$0xff]  ;;  %v37_v11 = vld [vmem:[%s594_s0 + $0x90] sm:$0xff] }
   0x2   :  { %v19_v2 = vld [vmem:[%s594_s0] sm:$0xff]  ;;  %v300_v3 = vpack.c.bf16 %v36_v1, %v35_v0  ;;  %v20_v4 = vld [vmem:[%s594_s0 + $0x8] sm:$0xff]  ;;  %v38_v13 = vld [vmem:[%s594_s0 + $0x98] sm:$0xff] }
   0x3   :  { %v67_v5 = vld [vmem:[%s594_s0 + $0x180] sm:$0xff]  ;;  %v68_v6 = vld [vmem:[%s594_s0 + $0x188] sm:$0xff]  ;;  %v302_v7 = vpack.c.bf16 %v20_v4, %v19_v2  ;;  %v21_v14 = vld [vmem:[%s594_s0 + $0x10] sm:$0xff]  ;;  %v304_v16 = vpack.c.bf16 %v38_v13, %v37_v11 }
   0x4   :  { %v332_v8 = vpack.c.bf16 %v68_v6, %v67_v5  ;;  %v51_v9 = vld [vmem:[%s594_s0 + $0x100] sm:$0xff]  ;;  %v52_v10 = vld [vmem:[%s594_s0 + $0x108] sm:$0xff]  ;;  %301 = vmatprep.subr.bf16.mxu0 %v300_v3  ;;  %v22_v15 = vld [vmem:[%s594_s0 + $0x18] sm:$0xff] }
   0x5   :  { %v334_v12 = vpack.c.bf16 %v52_v10, %v51_v9  ;;  %303 = vmatpush3.bf16.msra.mxu0 %v302_v7  ;;  %v306_v17 = vpack.c.bf16 %v22_v15, %v21_v14  ;;  %v69_v18 = vld [vmem:[%s594_s0 + $0x190] sm:$0xff]  ;;  %v70_v19 = vld [vmem:[%s594_s0 + $0x198] sm:$0xff]  ;;  %v39_v23 = vld [vmem:[%s594_s0 + $0xa0] sm:$0xff] }
   0x6   :  { %333 = vmatprep.subr.bf16.mxu1 %v332_v8  ;;  %v53_v20 = vld [vmem:[%s594_s0 + $0x110] sm:$0xff]  ;;  %v336_v21 = vpack.c.bf16 %v70_v19, %v69_v18  ;;  %v54_v22 = vld [vmem:[%s594_s0 + $0x118] sm:$0xff]  ;;  %v40_v24 = vld [vmem:[%s594_s0 + $0xa8] sm:$0xff]  ;;  %305 = vmatprep.subr.bf16.mxu0 %v304_v16 }
   0x7   :  { %335 = vmatpush3.bf16.msra.mxu1 %v334_v12  ;;  %v338_v25 = vpack.c.bf16 %v54_v22, %v53_v20  ;;  %v308_v26 = vpack.c.bf16 %v40_v24, %v39_v23  ;;  %v23_v27 = vld [vmem:[%s594_s0 + $0x20] sm:$0xff]  ;;  %v24_v28 = vld [vmem:[%s594_s0 + $0x28] sm:$0xff]  ;;  %v41_v35 = vld [vmem:[%s594_s0 + $0xb0] sm:$0xff] }
   0x8   :  { %v71_v29 = vld [vmem:[%s594_s0 + $0x1a0] sm:$0xff]  ;;  %337 = vmatprep.subr.bf16.mxu1 %v336_v21  ;;  %v72_v30 = vld [vmem:[%s594_s0 + $0x1a8] sm:$0xff]  ;;  %v310_v33 = vpack.c.bf16 %v24_v28, %v23_v27  ;;  %v42_v36 = vld [vmem:[%s594_s0 + $0xb8] sm:$0xff] }
   0x9   :  { %v55_v31 = vld [vmem:[%s594_s0 + $0x120] sm:$0xff]  ;;  %v56_v32 = vld [vmem:[%s594_s0 + $0x128] sm:$0xff]  ;;  %307 = vmatpush3.bf16.msra.mxu0 %v306_v17  ;;  %v340_v34 = vpack.c.bf16 %v72_v30, %v71_v29  ;;  %v25_v37 = vld [vmem:[%s594_s0 + $0x30] sm:$0xff]  ;;  %v312_v39 = vpack.c.bf16 %v42_v36, %v41_v35 }
   0xa   :  { %309 = vmatprep.subr.bf16.mxu0 %v308_v26  ;;  %v342_v38 = vpack.c.bf16 %v56_v32, %v55_v31  ;;  %v26_v40 = vld [vmem:[%s594_s0 + $0x38] sm:$0xff]  ;;  %v73_v41 = vld [vmem:[%s594_s0 + $0x1b0] sm:$0xff]  ;;  %v43_v46 = vld [vmem:[%s594_s0 + $0xc0] sm:$0xff] }
   0xb   :  { %339 = vmatpush3.bf16.msra.mxu1 %v338_v25  ;;  %v74_v42 = vld [vmem:[%s594_s0 + $0x1b8] sm:$0xff]  ;;  %v57_v44 = vld [vmem:[%s594_s0 + $0x130] sm:$0xff]  ;;  %v44_v47 = vld [vmem:[%s594_s0 + $0xc8] sm:$0xff]  ;;  %v314_v48 = vpack.c.bf16 %v26_v40, %v25_v37  ;;  %v84_v37 = vstv %s596_s1 }
   0xc   :  { %341 = vmatprep.subr.bf16.mxu1 %v340_v34  ;;  %v344_v43 = vpack.c.bf16 %v74_v42, %v73_v41  ;;  %v58_v45 = vld [vmem:[%s594_s0 + $0x138] sm:$0xff]  ;;  %v75_v49 = vld [vmem:[%s594_s0 + $0x1c0] sm:$0xff]  ;;  %v76_v50 = vld [vmem:[%s594_s0 + $0x1c8] sm:$0xff]  ;;  %v316_v52 = vpack.c.bf16 %v44_v47, %v43_v46 }
   0xd   :  { %311 = vmatpush3.bf16.msra.mxu0 %v310_v33  ;;  %v346_v51 = vpack.c.bf16 %v58_v45, %v57_v44  ;;  %v27_v53 = vld [vmem:[%s594_s0 + $0x40] sm:$0xff]  ;;  %v28_v54 = vld [vmem:[%s594_s0 + $0x48] sm:$0xff]  ;;  %v348_v56 = vpack.c.bf16 %v76_v50, %v75_v49  ;;  %v45_v58 = vld [vmem:[%s594_s0 + $0xd0] sm:$0xff] }
   0xe   :  { %313 = vmatprep.subr.bf16.mxu0 %v312_v39  ;;  %v59_v55 = vld [vmem:[%s594_s0 + $0x140] sm:$0xff]  ;;  %v60_v57 = vld [vmem:[%s594_s0 + $0x148] sm:$0xff]  ;;  %v46_v59 = vld [vmem:[%s594_s0 + $0xd8] sm:$0xff]  ;;  %v318_v62 = vpack.c.bf16 %v28_v54, %v27_v53 }
   0xf   :  { %343 = vmatpush3.bf16.msra.mxu1 %v342_v38  ;;  %v77_v60 = vld [vmem:[%s594_s0 + $0x1d0] sm:$0xff]  ;;  %v78_v61 = vld [vmem:[%s594_s0 + $0x1d8] sm:$0xff]  ;;  %v350_v63 = vpack.c.bf16 %v60_v57, %v59_v55  ;;  %v320_v0 = vpack.c.bf16 %v46_v59, %v45_v58  ;;  %v47_v6 = vld [vmem:[%s594_s0 + $0xe0] sm:$0xff] }
  0x10   :  { %345 = vmatprep.subr.bf16.mxu1 %v344_v43  ;;  %v29_v1 = vld [vmem:[%s594_s0 + $0x50] sm:$0xff]  ;;  %v30_v2 = vld [vmem:[%s594_s0 + $0x58] sm:$0xff]  ;;  %v352_v4 = vpack.c.bf16 %v78_v61, %v77_v60  ;;  %v48_v7 = vld [vmem:[%s594_s0 + $0xe8] sm:$0xff] }
  0x11   :  { %315 = vmatpush3.bf16.msra.mxu0 %v314_v48  ;;  %v61_v3 = vld [vmem:[%s594_s0 + $0x150] sm:$0xff]  ;;  %v62_v5 = vld [vmem:[%s594_s0 + $0x158] sm:$0xff]  ;;  %v79_v8 = vld [vmem:[%s594_s0 + $0x1e0] sm:$0xff]  ;;  %v322_v10 = vpack.c.bf16 %v30_v2, %v29_v1  ;;  %v324_v14 = vpack.c.bf16 %v48_v7, %v47_v6 }
  0x12   :  { %317 = vmatprep.subr.bf16.mxu0 %v316_v52  ;;  %v80_v9 = vld [vmem:[%s594_s0 + $0x1e8] sm:$0xff]  ;;  %v31_v11 = vld [vmem:[%s594_s0 + $0x60] sm:$0xff]  ;;  %v354_v13 = vpack.c.bf16 %v62_v5, %v61_v3  ;;  %v49_v19 = vld [vmem:[%s594_s0 + $0xf0] sm:$0xff] }
  0x13   :  { %347 = vmatpush3.bf16.msra.mxu1 %v346_v51  ;;  %v32_v12 = vld [vmem:[%s594_s0 + $0x68] sm:$0xff]  ;;  %v63_v15 = vld [vmem:[%s594_s0 + $0x160] sm:$0xff]  ;;  %v356_v18 = vpack.c.bf16 %v80_v9, %v79_v8  ;;  %v50_v20 = vld [vmem:[%s594_s0 + $0xf8] sm:$0xff] }
  0x14   :  { %349 = vmatprep.subr.bf16.mxu1 %v348_v56  ;;  %v64_v16 = vld [vmem:[%s594_s0 + $0x168] sm:$0xff]  ;;  %v18_v21 = vld [vmem:[%s595_s2 + $0x18] sm:$0xff]  ;;  %v81_v22 = vld [vmem:[%s594_s0 + $0x1f0] sm:$0xff]  ;;  %v326_v24 = vpack.c.bf16 %v32_v12, %v31_v11  ;;  %v328_v26 = vpack.c.bf16 %v50_v20, %v49_v19 }
  0x15   :  { %319 = vmatpush3.bf16.msra.mxu0 %v318_v62  ;;  %v16_v17 = vld [vmem:[%s595_s2 + $0x8] sm:$0xff]  ;;  %v82_v23 = vld [vmem:[%s594_s0 + $0x1f8] sm:$0xff]  ;;  %219 = vmatprep.mubr.f32.mxu1 %v18_v21  ;;  %v358_v25 = vpack.c.bf16 %v64_v16, %v63_v15  ;;  %v33_v27 = vld [vmem:[%s594_s0 + $0x70] sm:$0xff] }
  0x16   :  { %321 = vmatprep.subr.bf16.mxu0 %v320_v0  ;;  %149 = vmatprep.mubr.f32.mxu0 %v16_v17  ;;  %v34_v28 = vld [vmem:[%s594_s0 + $0x78] sm:$0xff]  ;;  %v360_v29 = vpack.c.bf16 %v82_v23, %v81_v22  ;;  %v65_v30 = vld [vmem:[%s594_s0 + $0x170] sm:$0xff]  ;;  %v15_v34 = vld [vmem:[%s595_s2] sm:$0xff] }
  0x17   :  { %351 = vmatpush3.bf16.msra.mxu1 %v350_v63  ;;  %v66_v31 = vld [vmem:[%s594_s0 + $0x178] sm:$0xff]  ;;  %v330_v32 = vpack.c.bf16 %v34_v28, %v33_v27  ;;  %v17_v35 = vld [vmem:[%s595_s2 + $0x10] sm:$0xff] }
  0x18   :  { %353 = vmatprep.subr.bf16.mxu1 %v352_v4  ;;  %v362_v33 = vpack.c.bf16 %v66_v31, %v65_v30 }
  0x19   :  { %323 = vmatpush3.bf16.msra.mxu0 %v322_v10 }
  0x1a   :  { %325 = vmatprep.subr.bf16.mxu0 %v324_v14 }
  0x1b   :  { %355 = vmatpush3.bf16.msra.mxu1 %v354_v13 }
  0x1c   :  { %357 = vmatprep.subr.bf16.mxu1 %v356_v18 }
  0x1d   :  { %327 = vmatpush3.bf16.msra.mxu0 %v326_v24 }
  0x1e   :  { %329 = vmatprep.subr.bf16.mxu0 %v328_v26 }
  0x1f   :  { %359 = vmatpush3.bf16.msra.mxu1 %v358_v25 }
  0x20   :  { %361 = vmatprep.subr.bf16.mxu1 %v360_v29 }
  0x21   :  { %331 = vmatpush3.bf16.msra.mxu0 %v330_v32 }
  0x23   :  { %363 = vmatpush3.bf16.msra.mxu1 %v362_v33 }
  0x24   :  { %150 = vmatmul.mubr.f32.vlgmr.msra.gmra.mrb[0].mxu0 %v15_v34 }
  0x26   :  { %220 = vmatmul.mubr.f32.vlgmr.msra.gmra.mrb[0].mxu1 %v17_v35 }
  0xf7   :  { %v262_v36 = vpop.f32.mrb[0].mxu0 }
  0xf8   :  { %v263_v38 = vpop.f32.mrb[1].mxu0 }
  0xf9   :  { %v297_v39 = vpop.f32.mrb[0].mxu1  ;;  %v264_v40 = vadd.f32 %v263_v38, %v262_v36 }
  0xfa   :  { %v298_v41 = vpop.f32.mrb[1].mxu1 }
  0xfb   :  { %v299_v42 = vadd.f32 %v298_v41, %v297_v39  ;;  %v152_v43 = vadd.f32 %v264_v40, %v84_v37 }
  0xfd   :  { %v222_v44 = vadd.f32 %v299_v42, %v152_v43 }
  0xff   :  { %225 = vst [vmem:[%s597_s3] sm:$0xff] %v222_v44 }

</bundles_post_ra>
